<compile_context>
chip_gen: v6e
topology: v6e:2x2x1
jax: 0.10.0
libtpu: 0.0.40
codegen_flags: <defaults>
</compile_context>

<pallas_src>
import math

import jax
import jax.numpy as jnp
from jax.experimental import pallas as pl
from jax.experimental.pallas import tpu as pltpu


_BLOCK_BUDGET_BYTES = 4 * 1024 * 1024   # per-block target; ~32 MiB pipelined total
_VMEM_LIMIT_BYTES = 48 * 1024 * 1024    # > default scoped limits, < v7x 64 MiB


def _sublane_tile(itemsize: int) -> int:
    # Native sublane tile for the dtype: f32 -> 8, bf16 -> 16, int8/fp8 -> 32.
    return {4: 8, 2: 16, 1: 32}.get(itemsize, 8)


def _cdiv(a: int, b: int) -> int:
    return -(-a // b)


# --------------------------------------------------------------------------
# Kernels
# --------------------------------------------------------------------------
def _dense_split_kernel(a_ref, b_ref, y_ref, z_ref):
    # a_ref / b_ref: (tp, 1, ts, 128) windows of half 0 / half 1 of the input.
    # y_ref / z_ref: (tp, ts, 128) lane- and sublane-dense output tiles.
    y_ref[...] = a_ref[:, 0]
    z_ref[...] = b_ref[:, 0]


def _generic_split_kernel(x_ref, y_ref, z_ref):
    # x_ref: (tp, 2, half, R) with full trailing extents, so the (8, 128)
    # tiling rule holds for any half / R.  Fallback (non-lane-aligned) path.
    y_ref[...] = x_ref[:, 0]
    z_ref[...] = x_ref[:, 1]


# --------------------------------------------------------------------------
# Tile selection
# --------------------------------------------------------------------------
def _choose_dense_tiles(P: int, S: int, itemsize: int):
    """Row tiles (tp, ts) for blocks of shape (tp[,1], ts, 128)."""
    sub = _sublane_tile(itemsize)
    rows_budget = max(_BLOCK_BUDGET_BYTES // (itemsize * 128), sub)

    if S <= sub:
        ts = S                                           # full extent: always legal
    else:
        ts = min((S // sub) * sub, max(sub, (rows_budget // sub) * sub))
    ts_padded = _cdiv(ts, sub) * sub                     # honest VMEM-tile padding
    tp = max(1, min(P, rows_budget // ts_padded))

    n_p, n_s = _cdiv(P, tp), _cdiv(S, ts)
    # Guarantee >= 2 grid steps when possible so both v7x TensorCores get work.
    if n_p * n_s == 1:
        if P >= 2:
            tp = _cdiv(P, 2)
        elif S >= 2 * sub:
            ts = max(sub, ((S // 2) // sub) * sub)
        n_p, n_s = _cdiv(P, tp), _cdiv(S, ts)
    return tp, ts, n_p, n_s


# --------------------------------------------------------------------------
# pallas_call wrappers
# --------------------------------------------------------------------------
def _split_lane_aligned(x, P, M, out_shape):
    """Main path: M % 128 == 0.  Fully lane/sublane-dense copy."""
    S = M // 128
    x4 = x.reshape(P, 2, S, 128)                          # free view, no transpose
    itemsize = jnp.dtype(x.dtype).itemsize
    tp, ts, n_p, n_s = _choose_dense_tiles(P, S, itemsize)

    in_block = (tp, 1, ts, 128)
    out_block = (tp, ts, 128)
    y3, z3 = pl.pallas_call(
        _dense_split_kernel,
        grid=(n_p, n_s),
        in_specs=[
            pl.BlockSpec(in_block, lambda p, s: (p, 0, s, 0)),   # half 0 window
            pl.BlockSpec(in_block, lambda p, s: (p, 1, s, 0)),   # half 1 window
        ],
        out_specs=[
            pl.BlockSpec(out_block, lambda p, s: (p, s, 0)),
            pl.BlockSpec(out_block, lambda p, s: (p, s, 0)),
        ],
        out_shape=(
            jax.ShapeDtypeStruct((P, S, 128), x.dtype),
            jax.ShapeDtypeStruct((P, S, 128), x.dtype),
        ),
        compiler_params=pltpu.CompilerParams(
            dimension_semantics=("parallel", "parallel"),
            vmem_limit_bytes=_VMEM_LIMIT_BYTES,
        ),
    )(x4, x4)                                             # same array, two windows
    return y3.reshape(out_shape), z3.reshape(out_shape)


def _split_generic(x, P, half, R, out_shape):
    """Fallback path: trailing extent not a multiple of 128."""
    x4 = x.reshape(P, 2, half, R)                         # free view
    itemsize = jnp.dtype(x.dtype).itemsize
    sub = _sublane_tile(itemsize)
    half_p = _cdiv(half, sub) * sub
    r_p = _cdiv(R, 128) * 128
    in_block_bytes = 2 * half_p * r_p * itemsize          # padded input block / row
    tp = max(1, min(P, _BLOCK_BUDGET_BYTES // max(in_block_bytes, 1)))
    if tp == P and P >= 2:                                 # keep both v7x cores busy
        tp = _cdiv(P, 2)
    # TODO(synk): if a single (2, half, R) slab exceeds the VMEM budget this
    # still uses tp=1 and relies on the vmem_limit_bytes headroom.
    n_p = _cdiv(P, tp)

    y3, z3 = pl.pallas_call(
        _generic_split_kernel,
        grid=(n_p,),
        in_specs=[pl.BlockSpec((tp, 2, half, R), lambda p: (p, 0, 0, 0))],
        out_specs=[
            pl.BlockSpec((tp, half, R), lambda p: (p, 0, 0)),
            pl.BlockSpec((tp, half, R), lambda p: (p, 0, 0)),
        ],
        out_shape=(
            jax.ShapeDtypeStruct((P, half, R), x.dtype),
            jax.ShapeDtypeStruct((P, half, R), x.dtype),
        ),
        compiler_params=pltpu.CompilerParams(
            dimension_semantics=("parallel",),
            vmem_limit_bytes=_VMEM_LIMIT_BYTES,
        ),
    )(x4)
    return y3.reshape(out_shape), z3.reshape(out_shape)


# --------------------------------------------------------------------------
# Module
# --------------------------------------------------------------------------
class Split:
    """Pallas port of flow_layers.Split (forward = chunk(2), reverse = concat)."""

    def __init__(self, dim: int = 0):
        # Batch dimension is not counted, same as the PyTorch module.
        self.dim = dim + 1

    def forward(self, x):
        ax = self.dim
        shape = x.shape
        C = shape[ax]
        if C % 2 != 0:
            # TODO(synk): torch.chunk allows uneven splits; only even sizes here.
            raise ValueError("Split kernel requires an even split-axis size")
        half = C // 2
        P = math.prod(shape[:ax])                          # leading dims (incl. batch)
        R = math.prod(shape[ax + 1:])                      # trailing dims
        M = half * R                                       # contiguous bytes per half/row
        out_shape = shape[:ax] + (half,) + shape[ax + 1:]

        if P == 0 or M == 0:
            empty = jnp.zeros(out_shape, x.dtype)
            return empty, empty
        if M % 128 == 0:
            return _split_lane_aligned(x, P, M, out_shape)
        return _split_generic(x, P, half, R, out_shape)

    def reverse(self, y, z):
        return jnp.concatenate([y, z], axis=self.dim)


if __name__ == "__main__":
    key = jax.random.PRNGKey(0)
    # NCHW input, like the PyTorch module expects: batch=2, channels=4, 16x16.
    x = jax.random.normal(key, (2, 4, 16, 16), dtype=jnp.float32)

    # Channel split (dim=0 -> axis 1): lane-aligned main path.
    split = Split(dim=0)
    y, z = jax.block_until_ready(split.forward(x))
    y_ref, z_ref = jnp.split(x, 2, axis=1)
    assert y.shape == (2, 2, 16, 16) and z.shape == (2, 2, 16, 16)
    assert jnp.array_equal(y, y_ref) and jnp.array_equal(z, z_ref)

    # Height split (dim=1 -> axis 2): main path with larger leading product P.
    split_h = Split(dim=1)
    yh, zh = jax.block_until_ready(split_h.forward(x))
    yh_ref, zh_ref = jnp.split(x, 2, axis=2)
    assert jnp.array_equal(yh, yh_ref) and jnp.array_equal(zh, zh_ref)

    # Non-128-aligned trailing extent: exercises the generic fallback path.
    x_odd = jax.random.normal(jax.random.PRNGKey(1), (2, 6, 10, 12), dtype=jnp.float32)
    yo, zo = jax.block_until_ready(Split(dim=0).forward(x_odd))
    yo_ref, zo_ref = jnp.split(x_odd, 2, axis=1)
    assert jnp.array_equal(yo, yo_ref) and jnp.array_equal(zo, zo_ref)

    # Round-trip via reverse (concat) must reproduce the input.
    xr = jax.block_until_ready(split.reverse(y, z))
    assert jnp.array_equal(xr, x)

    print("KERNEL_OK")
</pallas_src>

<mosaic_0001>
module attributes {stable_mosaic.version = 11 : i64} {
  func.func @_dense_split_kernel(%arg0: i32, %arg1: i32, %arg2: memref<1x1x4x128xf32, #tpu.memory_space<vmem>>, %arg3: memref<1x1x4x128xf32, #tpu.memory_space<vmem>>, %arg4: memref<1x4x128xf32, #tpu.memory_space<vmem>>, %arg5: memref<1x4x128xf32, #tpu.memory_space<vmem>>) attributes {dimension_semantics = [#tpu.dimension_semantics<parallel>, #tpu.dimension_semantics<parallel>], iteration_bounds = array<i64: 2, 1>, scalar_prefetch = 0 : i64, scratch_operands = 0 : i64, tpu.core_type = #tpu.core_type<tc>, window_params = [{transform_indices = @transform_0, window_bounds = array<i64: 1, 1, 4, 128>}, {transform_indices = @transform_1, window_bounds = array<i64: 1, 1, 4, 128>}, {transform_indices = @transform_2, window_bounds = array<i64: 1, 4, 128>}, {transform_indices = @transform_3, window_bounds = array<i64: 1, 4, 128>}]} {
    %c0 = arith.constant 0 : index
    %c0_0 = arith.constant 0 : index
    %c0_1 = arith.constant 0 : index
    %c0_2 = arith.constant 0 : index
    %0 = vector.load %arg2[%c0, %c0_0, %c0_1, %c0_2] : memref<1x1x4x128xf32, #tpu.memory_space<vmem>>, vector<1x1x4x128xf32>
    %1 = vector.shape_cast %0 : vector<1x1x4x128xf32> to vector<1x4x128xf32>
    %c0_3 = arith.constant 0 : index
    %c0_4 = arith.constant 0 : index
    %c0_5 = arith.constant 0 : index
    %2 = vector.load %arg4[%c0_3, %c0_4, %c0_5] : memref<1x4x128xf32, #tpu.memory_space<vmem>>, vector<1x4x128xf32>
    tpu.vector_store %arg4[%c0_3, %c0_4, %c0_5], %1 {strides = array<i32>} : memref<1x4x128xf32, #tpu.memory_space<vmem>>, vector<1x4x128xf32>,
    %c0_6 = arith.constant 0 : index
    %c0_7 = arith.constant 0 : index
    %c0_8 = arith.constant 0 : index
    %c0_9 = arith.constant 0 : index
    %3 = vector.load %arg3[%c0_6, %c0_7, %c0_8, %c0_9] : memref<1x1x4x128xf32, #tpu.memory_space<vmem>>, vector<1x1x4x128xf32>
    %4 = vector.shape_cast %3 : vector<1x1x4x128xf32> to vector<1x4x128xf32>
    %c0_10 = arith.constant 0 : index
    %c0_11 = arith.constant 0 : index
    %c0_12 = arith.constant 0 : index
    %5 = vector.load %arg5[%c0_10, %c0_11, %c0_12] : memref<1x4x128xf32, #tpu.memory_space<vmem>>, vector<1x4x128xf32>
    tpu.vector_store %arg5[%c0_10, %c0_11, %c0_12], %4 {strides = array<i32>} : memref<1x4x128xf32, #tpu.memory_space<vmem>>, vector<1x4x128xf32>,
    return
  }
  func.func @transform_0(%arg0: i32, %arg1: i32) -> (i32, i32, i32, i32) {
    %c0_i32 = arith.constant 0 : i32
    %c0_i32_0 = arith.constant 0 : i32
    %c0_i32_1 = arith.constant 0 : i32
    return %arg0, %c0_i32, %arg1, %c0_i32_0 : i32, i32, i32, i32
  }
  func.func @transform_1(%arg0: i32, %arg1: i32) -> (i32, i32, i32, i32) {
    %c1_i32 = arith.constant 1 : i32
    %c0_i32 = arith.constant 0 : i32
    %c0_i32_0 = arith.constant 0 : i32
    return %arg0, %c1_i32, %arg1, %c0_i32 : i32, i32, i32, i32
  }
  func.func @transform_2(%arg0: i32, %arg1: i32) -> (i32, i32, i32) {
    %c0_i32 = arith.constant 0 : i32
    %c0_i32_0 = arith.constant 0 : i32
    return %arg0, %arg1, %c0_i32 : i32, i32, i32
  }
  func.func @transform_3(%arg0: i32, %arg1: i32) -> (i32, i32, i32) {
    %c0_i32 = arith.constant 0 : i32
    %c0_i32_0 = arith.constant 0 : i32
    return %arg0, %arg1, %c0_i32 : i32, i32, i32
  }
}

</mosaic_0001>

<bundles_post_ra>
// kernel: tpu_custom_call.1
= control target key start
LH: loop header
LB: loop body
LE: loop exit
PB: predicated region body
PF: predicated region fallthrough
CT: control target
= control target key end

     0   :  { %9 = vsyncpa [#allocation3], 0  ;;  %s930_s0 = inlined_call_operand.hbm [shape: f32[2,2,4,128], index: 0, kind: input, shape index: {}]   ;;  %s931_s1 = inlined_call_operand.hbm [shape: f32[2,2,4,128], index: 1, kind: input, shape index: {}]   ;;  %s932_s2 = inlined_call_operand.hbm [shape: f32[2,4,128], index: 2, kind: output, shape index: {0}]   ;;  %s933_s3 = inlined_call_operand.hbm [shape: f32[2,4,128], index: 3, kind: output, shape index: {1}]  }
   0x1   :  { %11 = vsyncpa [#allocation3 + $0x1], 0 }
   0x2   :  { %12 = vsyncpa [#allocation6], 0 }
   0x3   :  { %14 = vsyncpa [#allocation6 + $0x1], 0 }
   0x4   :  { %15 = vsyncpa [#allocation4], 0 }
   0x5   :  { %17 = vsyncpa [#allocation4 + $0x1], 0 }
   0x6   :  { %18 = vsyncpa [#allocation9], 0 }
   0x7   :  { %20 = vsyncpa [#allocation9 + $0x1], 0  ;;  %s729_s12 = smov 0   ;;  %s731_s13 = smov 0  }
   0x8   :  { %s733_s14 = smov 0   ;;  %s735_s15 = smov 0  }
   0x9   :  { %s737_s16 = smov 0   ;;  %s739_s17 = smov 0  }
   0xa LB: > { %s437_s18 = sadd.s32 4294967295, %s703_s17   ;;  %s438_s19 = sadd.s32 4294967294, %s703_s17   ;;  %s703_s17 = sphi %s739_s17, %s26_s17   ;;  %s699_s16 = sphi %s737_s16, %s945_s16   ;;  %s695_s15 = sphi %s735_s15, %s944_s15   ;;  %s691_s14 = sphi %s733_s14, %s943_s14   ;;  %s687_s13 = sphi %s731_s13, %s942_s13   ;;  %s683_s12 = sphi %s729_s12, %s941_s12  }
   0xb   : > { %s38_s20 = sadd.s32 1, %s699_s16  ;;  %s47_s21 = sadd.s32 1, %s691_s14 }
   0xc   : > { %p40_p0 = scmp.ge.s32.totalorder %s38_s20, 2  ;;  %p54_p1 = scmp.ne.s32.totalorder %s691_s14, %s687_s13 }
   0xd   : > { %p55_p2 = scmp.eq.s32.totalorder %s703_s17, 0  ;;  %p60_p3 = scmp.ne.s32.totalorder %s687_s13, %s683_s12 }
   0xe   : > { %s947_s20 = smov (%p40_p0, %s38_s20), 0  ;;  %p61_p5 = scmp.eq.s32.totalorder %s437_s18, 0 }
   0xf   : > { %p770_p4 = por %p55_p2, %p54_p1  ;;  %s42_s23 = ssub.s32 %s699_s16, %s947_s20 }
  0x10   : > { %p114_p6 = scmp.eq.s32.totalorder %s437_s18, 1  ;;  %p45_p7 = scmp.eq.s32.totalorder %s42_s23, 0 }
  0x11   : > { %p776_p8 = por %p61_p5, %p60_p3  ;;  %p120_p10 = scmp.eq.s32.totalorder %s438_s19, 1 }
  0x12   : > { %p780_p9 = por %p114_p6, %p54_p1  ;;  %p482_p13 = scmp.lt.s32.totalorder %s703_s17, 2 }
  0x13   : > { %s785_s26 = scalar_select %p45_p7, %s691_s14, %s47_s21  }
  0x14   : > { %p787_p11 = por %p120_p10, %p60_p3  ;;  %s794_s28 = sand.u32 1, %s691_s14  }
  0x15   : > { %s441_s29 = sshll.u32 %s794_s28, 2  ;;  %s458_s30 = sshll.u32 %s699_s16, 7 }
  0x16   : > { %s179_s6 = scalar_lea.hbm %s930_s0, %s458_s30  ;;  %s172_s7 = scalar_lea.vmem [#allocation2], %s441_s29 }
  0x17   : > { %s181_s8 = sshll.u32 %s172_s7, 4  ;;  %p803_p0 = pnand %p482_p13, %p770_p4  ;;  %s182_s8 = int_to_ptr.vmem [resolvable:$true] %s181_s8 }
  0x18   : > { %p447_p1 = scmp.ge.s32.totalorder %s703_s17, 1  ;;  %p207_p2 = scmp.lt.s32.totalorder %s703_s17, 3 }
  0x19   : > { %s169_s10 = scalar_lea.sflag [#allocation3], %s794_s28  ;;  %p534_p3 = pneg %p803_p0 }
  0x1a   : > { %s545_s11 = scalar_lea.vmem %s182_s8, 64  ;;  %s705_s18 = smov [#allocation2]  }
  0x1b   : > { %p546_p5 = scmp.ne.s32.totalorder %s182_s8, %s545_s11  ;;  %s550_s19 = sshll.u32 %s705_s18, 4  ;;  %s551_s19 = int_to_ptr.vmem [resolvable:$false] %s550_s19 }
  0x1c   : > { %s552_s21 = scalar_lea.vmem %s551_s19, 128  ;;  %p553_p4 = scmp.lt.s32.totalorder %s182_s8, %s551_s19 }
  0x1d   : > { %p548_p6 = pnand %p546_p5, %p534_p3  ;;  %p554_p10 = scmp.lt.s32.totalorder %s552_s21, %s545_s11 }
  0x1f   : > { %p549_p7 = pneg %p548_p6  ;;  %p555_p13 = por %p554_p10, %p553_p4 }
  0x21   : > { %p556_p12 = pnand %p555_p13, %p549_p7 }
  0x23   : > { %559 = shalt.err (!%p556_p12)
}
  0x24   : > { %471 = dma.hbm_to_vmem [thread:$0]  (!%p803_p0), %s179_s6, 64, %s182_s8, %s169_s10  }
  0x25   : > { %p821_p5 = pnand %p447_p1, %p207_p2  ;;  %s349_s5 = scalar_lea.hbm %s931_s1, %s458_s30 }
  0x26   : > { %s192_s7 = scalar_lea.vmem [#allocation5], %s441_s29  ;;  %s350_s18 = scalar_lea.hbm %s349_s5, 64 }
  0x27   : > { %s202_s11 = sshll.u32 %s192_s7, 4  ;;  %s189_s19 = scalar_lea.sflag [#allocation6], %s794_s28  ;;  %s203_s11 = int_to_ptr.vmem [resolvable:$true] %s202_s11 }
  0x28   : > { %s573_s21 = scalar_lea.vmem %s203_s11, 64  ;;  %s706_s6 = smov [#allocation5]  }
  0x29   : > { %p574_p12 = scmp.ne.s32.totalorder %s203_s11, %s573_s21  ;;  %s578_s8 = sshll.u32 %s706_s6, 4  ;;  %s579_s8 = int_to_ptr.vmem [resolvable:$false] %s578_s8 }
  0x2a   : > { %s580_s10 = scalar_lea.vmem %s579_s8, 128  ;;  %p581_p1 = scmp.lt.s32.totalorder %s203_s11, %s579_s8 }
  0x2b   : > { %p576_p6 = pnand %p574_p12, %p534_p3  ;;  %p582_p2 = scmp.lt.s32.totalorder %s580_s10, %s573_s21 }
  0x2d   : > { %p577_p7 = pneg %p576_p6  ;;  %p583_p4 = por %p582_p2, %p581_p1 }
  0x2f   : > { %p584_p10 = pnand %p583_p4, %p577_p7 }
  0x31   : > { %587 = shalt.err (!%p584_p10)
}
  0x32   : > { %474 = dma.hbm_to_vmem [thread:$0]  (!%p803_p0), %s350_s18, 64, %s203_s11, %s189_s19  }
  0x33   : > { %211 = sbr.rel (%p821_p5) target bundleno = 106 (0x6a), region = 28  ;;  %s837_s28 = sand.u32 (!%p821_p5), 1, %s687_s13  }
  0x34   : > { %s448_s29 = sshll.u32 (!%p821_p5), %s837_s28, 2  ;;  %s214_s30 = scalar_lea.sflag (!%p821_p5), [#allocation3], %s837_s28 }
  0x35   : > { %s217_s23 = scalar_lea.vmem (!%p821_p5), [#allocation2], %s448_s29 }
  0x38   : > { %666 = dma.done.wait (%p776_p8), %s214_s30, 64  }
  0x39   : > { %668 = vsyncadd (%p776_p8), %s214_s30, 4294967232  ;;  %s223_s9 = scalar_lea.sflag [#allocation6], %s837_s28  ;;  %s226_s4 = scalar_lea.vmem [#allocation5], %s448_s29 }
  0x3a   : > { %670 = dma.done.wait (%p776_p8), %s223_s9, 64  }
  0x3b   : > { %672 = vsyncadd (%p776_p8), %s223_s9, 4294967232  ;;  %s251_s22 = scalar_lea.vmem [#allocation7], %s448_s29  ;;  %s258_s7 = scalar_lea.vmem [#allocation8], %s448_s29  ;;  %v259_v0 = vld [vmem:[%s217_s23] sm:$0xf] }
  0x3c   : > { %s283_s5 = sshll.u32 %s251_s22, 4  ;;  %s297_s11 = sshll.u32 %s258_s7, 4  ;;  %v261_v1 = vld [vmem:[%s226_s4] sm:$0xf]  ;;  %260 = vst [vmem:[%s251_s22] sm:$0xf] %v259_v0  ;;  %s851_s5 = int_to_ptr.vmem [resolvable:$true] %s283_s5  ;;  %s853_s11 = int_to_ptr.vmem [resolvable:$true] %s297_s11 }
  0x3d   : > { %s454_s18 = sshll.u32 %s695_s15, 6  ;;  %262 = vst [vmem:[%s258_s7] sm:$0xf] %v261_v1  ;;  %s264_s15 = scalar_lea.sflag [#allocation4], %s837_s28 }
  0x3e   : > { %s858_s24 = scalar_lea.hbm %s932_s2, %s454_s18  ;;  %s863_s10 = scalar_lea.hbm %s933_s3, %s454_s18 }
  0x3f   : > { %s589_s29 = scalar_lea.vmem %s851_s5, 64  ;;  %s707_s30 = smov [#allocation7]  }
  0x40   : > { %p590_p8 = scmp.ne.s32.totalorder %s851_s5, %s589_s29  ;;  %s593_s9 = sshll.u32 %s707_s30, 4  ;;  %s594_s9 = int_to_ptr.vmem [resolvable:$false] %s593_s9 }
  0x41   : > { %s595_s19 = scalar_lea.vmem %s594_s9, 128  ;;  %p596_p13 = scmp.lt.s32.totalorder %s851_s5, %s594_s9 }
  0x42   : > { %p591_p0 = pnand %p590_p8, %p780_p9  ;;  %p597_p5 = scmp.lt.s32.totalorder %s595_s19, %s589_s29 }
  0x44   : > { %p592_p3 = pneg %p591_p0  ;;  %p598_p12 = por %p597_p5, %p596_p13 }
  0x46   : > { %p599_p6 = pnand %p598_p12, %p592_p3 }
  0x48   : > { %602 = shalt.err (!%p599_p6)
}
  0x49   : > { %s603_s23 = scalar_lea.hbm %s858_s24, 64  ;;  %s607_s7 = scalar_lea.hbm %s932_s2, 128 }
  0x4a   : > { %p604_p7 = scmp.ne.s32.totalorder %s858_s24, %s603_s23  ;;  %p608_p4 = scmp.lt.s32.totalorder %s858_s24, %s932_s2 }
  0x4b   : > { %p609_p10 = scmp.lt.s32.totalorder %s607_s7, %s603_s23 }
  0x4c   : > { %p605_p1 = pnand %p604_p7, %p780_p9 }
  0x4d   : > { %p610_p8 = por %p609_p10, %p608_p4 }
  0x4e   : > { %p606_p2 = pneg %p605_p1 }
  0x50   : > { %p611_p0 = pnand %p610_p8, %p606_p2 }
  0x52   : > { %614 = shalt.err (!%p611_p0)
}
  0x53   : > { %464 = dma.vmem_to_hbm [thread:$0]  (%p780_p9), %s851_s5, 64, %s858_s24, %s264_s15  }
  0x54   : > { %s269_s6 = scalar_lea.sflag [#allocation9], %s837_s28  ;;  %s615_s8 = scalar_lea.vmem %s853_s11, 64 }
  0x55   : > { %p616_p3 = scmp.ne.s32.totalorder %s853_s11, %s615_s8  ;;  %s708_s29 = smov [#allocation8]  }
  0x56   : > { %s619_s30 = sshll.u32 %s708_s29, 4  ;;  %s620_s30 = int_to_ptr.vmem [resolvable:$false] %s619_s30 }
  0x57   : > { %p617_p13 = pnand %p616_p3, %p780_p9  ;;  %s621_s9 = scalar_lea.vmem %s620_s30, 128 }
  0x58   : > { %p622_p12 = scmp.lt.s32.totalorder %s853_s11, %s620_s30  ;;  %p623_p6 = scmp.lt.s32.totalorder %s621_s9, %s615_s8 }
  0x59   : > { %p618_p5 = pneg %p617_p13 }
  0x5a   : > { %p624_p7 = por %p623_p6, %p622_p12 }
  0x5c   : > { %p625_p1 = pnand %p624_p7, %p618_p5 }
  0x5e   : > { %628 = shalt.err (!%p625_p1)
}
  0x5f   : > { %s629_s5 = scalar_lea.hbm %s863_s10, 64  ;;  %s633_s15 = scalar_lea.hbm %s933_s3, 128 }
  0x60   : > { %p630_p2 = scmp.ne.s32.totalorder %s863_s10, %s629_s5  ;;  %p634_p8 = scmp.lt.s32.totalorder %s863_s10, %s933_s3 }
  0x61   : > { %p635_p0 = scmp.lt.s32.totalorder %s633_s15, %s629_s5 }
  0x62   : > { %p631_p4 = pnand %p630_p2, %p780_p9 }
  0x63   : > { %p636_p3 = por %p635_p0, %p634_p8 }
  0x64   : > { %p632_p10 = pneg %p631_p4 }
  0x66   : > { %p637_p13 = pnand %p636_p3, %p632_p10 }
  0x68   : > { %640 = shalt.err (!%p637_p13)
}
  0x69   : > { %465 = dma.vmem_to_hbm [thread:$0]  (%p780_p9), %s853_s11, 64, %s863_s10, %s269_s6  }
  0x6a PF: > { %s309_s4 = sand.u32 1, %s683_s12   ;;  %p940_p5 = scmp.ge.s32.totalorder %s703_s17, 2 }
  0x6b   : > { %s310_s22 = scalar_lea.sflag [#allocation4], %s309_s4 }
  0x6c   : > { %p476_p12 = pnand %p940_p5, %p787_p11 }
  0x6e   : > { %p477_p6 = pneg %p476_p12 }
  0x70   : > { %674 = dma.done.wait (%p477_p6), %s310_s22, 64  }
  0x71   : > { %676 = vsyncadd (%p477_p6), %s310_s22, 4294967232  ;;  %s319_s7 = scalar_lea.sflag [#allocation9], %s309_s4 }
  0x72   : > { %678 = dma.done.wait (%p477_p6), %s319_s7, 64  }
  0x73   : > { %680 = vsyncadd (%p477_p6), %s319_s7, 4294967232  ;;  %s26_s17 = sadd.s32 1, %s703_s17   ;;  %s941_s12 = smov %s687_s13 }
  0x74   : > { %p23_p7 = scmp.ge.s32.totalorder %s26_s17, 4   ;;  %s942_s13 = smov %s691_s14 }
  0x75   : > { %s943_s14 = smov %s785_s26  ;;  %s944_s15 = smov %s699_s16 }
  0x76   : > { %s945_s16 = smov %s947_s20  ;;  %25 = sbr.rel (!%p23_p7) target bundleno = 10 (0xa), region = 103 }
  0x7b   :  { %324 = vsyncpa [#allocation3], 1 }
  0x7c   :  { %326 = vsyncpa [#allocation3 + $0x1], 1 }
  0x7d   :  { %327 = vsyncpa [#allocation6], 1 }
  0x7e   :  { %329 = vsyncpa [#allocation6 + $0x1], 1 }
  0x7f   :  { %330 = vsyncpa [#allocation4], 1 }
  0x80   :  { %332 = vsyncpa [#allocation4 + $0x1], 1 }
  0x81   :  { %333 = vsyncpa [#allocation9], 1 }
  0x82   :  { %335 = vsyncpa [#allocation9 + $0x1], 1 }

</bundles_post_ra>
